<compile_context>
chip_gen: v7x
topology: tpu7x:2x2x1
jax: 0.10.0
libtpu: 0.0.40
codegen_flags: <defaults>
</compile_context>

<pallas_src>
import math
import functools

import jax
import jax.numpy as jnp
import numpy as np
from jax.experimental import pallas as pl
from jax.experimental.pallas import tpu as pltpu


# ---------------------------------------------------------------------------
# Small helpers: hardware VMEM capacity & tile selection.
# ---------------------------------------------------------------------------
def _vmem_capacity_bytes():
    try:
        info = pltpu.get_tpu_info()
        cap = getattr(info, "vmem_capacity_bytes", None)
        if cap:
            return int(cap)
    except Exception:
        pass
    return 64 * 1024 * 1024  # conservative default (v7x physical per-TC VMEM)


def _pick_tile(L, target):
    """Largest tile <= target that divides L (full L at small shapes)."""
    t = min(L, target)
    while L % t != 0:
        t -= 1
    return t


def _kernel2_vmem_bytes(TQ, TK, E, Dh, H):
    """Rough VMEM footprint of kernel 2 (double-buffered blocks + scratch)."""
    dbl = 2
    q_blk = dbl * TQ * Dh * 2
    kv_blk = dbl * 2 * TK * Dh * 2
    x_blk = dbl * TQ * E * 4
    out_blk = dbl * TQ * E * 4
    wo_res = dbl * H * Dh * E * 2
    vecs = dbl * 3 * E * 4
    scratch = (2 * TQ + TQ * Dh + TQ * E) * 4
    work = 4 * TQ * TK * 4  # scores / exp temporaries headroom
    return q_blk + kv_blk + x_blk + out_blk + wo_res + vecs + scratch + work


def _kernel1_vmem_bytes(TR, E, Dh, H):
    dbl = 2
    x_blk = dbl * TR * E * 4
    w_res = dbl * H * E * 3 * Dh * 2
    b_res = dbl * H * 3 * Dh * 4
    out_blk = dbl * 3 * TR * Dh * 2
    work = 2 * TR * 3 * Dh * 4
    return x_blk + w_res + b_res + out_blk + work


# ---------------------------------------------------------------------------
# Kernel 1: fused per-head QKV projection (weights resident in VMEM).
# grid = (N, L//TR, H)
# ---------------------------------------------------------------------------
def _qkv_proj_kernel(x_ref, w_ref, b_ref, q_ref, k_ref, v_ref, *, head_dim):
    h = pl.program_id(2)
    xb = x_ref[...].astype(jnp.bfloat16)                            # (TR, E)
    w = w_ref[h]                                                    # (E, 3*Dh) bf16
    qkv = jnp.dot(xb, w, preferred_element_type=jnp.float32)
    qkv = qkv + b_ref[h]                                            # (TR, 3*Dh) f32
    q_ref[...] = qkv[:, :head_dim].astype(q_ref.dtype)              # pre-scaled q
    k_ref[...] = qkv[:, head_dim:2 * head_dim].astype(k_ref.dtype)
    v_ref[...] = qkv[:, 2 * head_dim:].astype(v_ref.dtype)


# ---------------------------------------------------------------------------
# Kernel 2: flash attention + output projection + residual + LayerNorm.
# grid = (N, L//TQ, H, L//TK)
# ---------------------------------------------------------------------------
def _flash_ln_kernel(q_ref, k_ref, v_ref, x_ref, wo_ref, bo_ref,
                     gamma_ref, beta_ref, out_ref,
                     m_scr, l_scr, acc_scr, o_scr):
    h = pl.program_id(2)
    ki = pl.program_id(3)
    last_h = pl.num_programs(2) - 1
    last_ki = pl.num_programs(3) - 1

    # Once per (batch, q-block): seed the fused accumulator with the residual
    # input and the output-projection bias.
    @pl.when(jnp.logical_and(h == 0, ki == 0))
    def _():
        o_scr[...] = x_ref[...].astype(jnp.float32) + bo_ref[...]

    # Once per head: reset the online-softmax state.
    @pl.when(ki == 0)
    def _():
        m_scr[...] = jnp.full_like(m_scr, -jnp.inf)
        l_scr[...] = jnp.zeros_like(l_scr)
        acc_scr[...] = jnp.zeros_like(acc_scr)

    q = q_ref[...]                                                  # (TQ, Dh) bf16
    k = k_ref[...]                                                  # (TK, Dh) bf16
    v = v_ref[...]                                                  # (TK, Dh) bf16

    # Scores: contract the last axis of both operands -> no kT transpose.
    s = jax.lax.dot_general(q, k, (((1,), (1,)), ((), ())),
                            preferred_element_type=jnp.float32)     # (TQ, TK) f32

    m_prev = m_scr[...]
    m_new = jnp.maximum(m_prev, jnp.max(s, axis=-1, keepdims=True))
    alpha = jnp.exp(m_prev - m_new)
    p = jnp.exp(s - m_new)
    l_scr[...] = alpha * l_scr[...] + jnp.sum(p, axis=-1, keepdims=True)
    acc_scr[...] = alpha * acc_scr[...] + jnp.dot(
        p.astype(jnp.bfloat16), v, preferred_element_type=jnp.float32)
    m_scr[...] = m_new

    # End of this head's KV loop: finish the softmax and fold in this head's
    # slice of the (VMEM-resident) output projection.
    @pl.when(ki == last_ki)
    def _():
        ctx = acc_scr[...] * pl.reciprocal(l_scr[...], approx=True)  # (TQ, Dh)
        o_scr[...] += jnp.dot(ctx.astype(jnp.bfloat16), wo_ref[h],
                              preferred_element_type=jnp.float32)    # (TQ, E)

    # All heads done: residual already accumulated -> LayerNorm -> write out.
    @pl.when(jnp.logical_and(h == last_h, ki == last_ki))
    def _():
        res = o_scr[...]
        mu = jnp.mean(res, axis=-1, keepdims=True)
        var = jnp.mean((res - mu) ** 2, axis=-1, keepdims=True)
        y = (res - mu) * jax.lax.rsqrt(var + 1e-5)
        out_ref[...] = (y * gamma_ref[...] + beta_ref[...]).astype(out_ref.dtype)


# ---------------------------------------------------------------------------
# Wrapper
# ---------------------------------------------------------------------------
def flash_attention_layer(src, params, *, nheads):
    """src: (L, N, E) float32 -> (L, N, E) float32 (eval-mode forward)."""
    L, N, E = src.shape
    assert E % nheads == 0
    Dh = E // nheads
    wqkv_h, bqkv_h, wo_h, bo, gamma, beta = params

    x = jnp.transpose(src, (1, 0, 2))                               # (N, L, E)

    # ---- per-generation VMEM budget & tile selection ----------------------
    cap = _vmem_capacity_bytes()
    budget = int(0.80 * cap)

    TR = _pick_tile(L, 512)
    TQ = _pick_tile(L, 512)
    TK = _pick_tile(L, 1024)
    # Shrink KV tile first, then Q tile, until the kernel-2 footprint fits.
    while _kernel2_vmem_bytes(TQ, TK, E, Dh, nheads) > budget and TK > 128:
        TK = _pick_tile(L, TK // 2)
    while _kernel2_vmem_bytes(TQ, TK, E, Dh, nheads) > budget and TQ > 128:
        TQ = _pick_tile(L, TQ // 2)
    assert L % TR == 0 and L % TQ == 0 and L % TK == 0

    k1_limit = int(min(max(2 * _kernel1_vmem_bytes(TR, E, Dh, nheads),
                           16 * 1024 * 1024), int(0.85 * cap)))
    k2_limit = int(min(max(2 * _kernel2_vmem_bytes(TQ, TK, E, Dh, nheads),
                           32 * 1024 * 1024), int(0.85 * cap)))

    # ---- kernel 1: fused QKV projection (resident weights) ---------------
    qkv_struct = jax.ShapeDtypeStruct((N, nheads, L, Dh), jnp.bfloat16)
    q, k, v = pl.pallas_call(
        functools.partial(_qkv_proj_kernel, head_dim=Dh),
        out_shape=(qkv_struct, qkv_struct, qkv_struct),
        grid_spec=pltpu.PrefetchScalarGridSpec(
            num_scalar_prefetch=0,
            grid=(N, L // TR, nheads),
            in_specs=[
                # x tile: block index constant across the (innermost) head
                # axis -> fetched once per (n, r), reused for all heads.
                pl.BlockSpec((None, TR, E), lambda n, r, h: (n, r, 0)),
                # Full fused QKV weight / bias: constant index_map -> resident
                # in VMEM for the whole grid; head slice taken in-kernel.
                pl.BlockSpec((nheads, E, 3 * Dh), lambda n, r, h: (0, 0, 0)),
                pl.BlockSpec((nheads, 1, 3 * Dh), lambda n, r, h: (0, 0, 0)),
            ],
            out_specs=[
                pl.BlockSpec((None, None, TR, Dh), lambda n, r, h: (n, h, r, 0)),
                pl.BlockSpec((None, None, TR, Dh), lambda n, r, h: (n, h, r, 0)),
                pl.BlockSpec((None, None, TR, Dh), lambda n, r, h: (n, h, r, 0)),
            ],
        ),
        compiler_params=pltpu.CompilerParams(
            dimension_semantics=("parallel", "parallel", "parallel"),
            vmem_limit_bytes=k1_limit),
    )(x, wqkv_h, bqkv_h)

    # ---- kernel 2: flash attention + out-proj + residual + LayerNorm ------
    out = pl.pallas_call(
        _flash_ln_kernel,
        out_shape=jax.ShapeDtypeStruct((N, L, E), src.dtype),
        grid_spec=pltpu.PrefetchScalarGridSpec(
            num_scalar_prefetch=0,
            grid=(N, L // TQ, nheads, L // TK),
            in_specs=[
                pl.BlockSpec((None, None, TQ, Dh), lambda n, qi, h, ki: (n, h, qi, 0)),
                pl.BlockSpec((None, None, TK, Dh), lambda n, qi, h, ki: (n, h, ki, 0)),
                pl.BlockSpec((None, None, TK, Dh), lambda n, qi, h, ki: (n, h, ki, 0)),
                # residual x: constant across (h, ki) -> fetched once / q-block
                pl.BlockSpec((None, TQ, E), lambda n, qi, h, ki: (n, qi, 0)),
                # full Wo resident in VMEM (constant index_map)
                pl.BlockSpec((nheads, Dh, E), lambda n, qi, h, ki: (0, 0, 0)),
                pl.BlockSpec((1, E), lambda n, qi, h, ki: (0, 0)),   # bo
                pl.BlockSpec((1, E), lambda n, qi, h, ki: (0, 0)),   # gamma
                pl.BlockSpec((1, E), lambda n, qi, h, ki: (0, 0)),   # beta
            ],
            out_specs=pl.BlockSpec((None, TQ, E), lambda n, qi, h, ki: (n, qi, 0)),
            scratch_shapes=[
                pltpu.VMEM((TQ, 1), jnp.float32),    # running max m
                pltpu.VMEM((TQ, 1), jnp.float32),    # running denom l
                pltpu.VMEM((TQ, Dh), jnp.float32),   # per-head context acc
                pltpu.VMEM((TQ, E), jnp.float32),    # residual + out-proj acc
            ],
        ),
        compiler_params=pltpu.CompilerParams(
            # n / q-block axes parallel (megacore on v7x); heads / kv-blocks
            # are sequential accumulation axes (shared scratch).
            dimension_semantics=("parallel", "parallel", "arbitrary", "arbitrary"),
            vmem_limit_bytes=k2_limit),
    )(q, k, v, x, wo_h, bo, gamma, beta)

    return jnp.transpose(out, (1, 0, 2))                            # (L, N, E)


# ---------------------------------------------------------------------------
# Parameter initialization (PyTorch layout) and kernel-layout preparation.
# ---------------------------------------------------------------------------
def init_params(key, d_model, dtype=jnp.float32):
    """Matches FlashAttentionLayer.__init__ (xavier weights, zero biases)."""
    k_in, k_out = jax.random.split(key)
    bound_in = math.sqrt(6.0 / (d_model + 3 * d_model))
    in_proj_w = jax.random.uniform(k_in, (3 * d_model, d_model), dtype,
                                   minval=-bound_in, maxval=bound_in)
    bound_out = math.sqrt(6.0 / (2 * d_model))
    out_proj_w = jax.random.uniform(k_out, (d_model, d_model), dtype,
                                    minval=-bound_out, maxval=bound_out)
    in_proj_b = jnp.zeros((3 * d_model,), dtype)
    out_proj_b = jnp.zeros((d_model,), dtype)
    gamma = jnp.ones((d_model,), dtype)
    beta = jnp.zeros((d_model,), dtype)
    return in_proj_w, in_proj_b, out_proj_w, out_proj_b, gamma, beta


def prepare_params(raw, *, nheads):
    """PyTorch-layout params -> head-major, bf16, scale-folded kernel params."""
    in_w, in_b, out_w, out_b, gamma, beta = raw
    E = out_w.shape[0]
    Dh = E // nheads
    scale = 1.0 / math.sqrt(Dh)

    wq, wk, wv = jnp.split(in_w, 3, axis=0)            # each (E, E); y = x @ W^T
    bq, bk, bv = jnp.split(in_b, 3)

    wq_t = wq.T * scale                                # fold 1/sqrt(Dh) into q
    wk_t = wk.T
    wv_t = wv.T
    bq = bq * scale

    # Fused per-head projection weights: (H, E, 3*Dh), bf16.
    wq_h = wq_t.reshape(E, nheads, Dh)
    wk_h = wk_t.reshape(E, nheads, Dh)
    wv_h = wv_t.reshape(E, nheads, Dh)
    wqkv = jnp.concatenate([wq_h, wk_h, wv_h], axis=-1)        # (E, H, 3*Dh)
    wqkv = jnp.transpose(wqkv, (1, 0, 2)).astype(jnp.bfloat16)  # (H, E, 3*Dh)

    bqkv = jnp.concatenate([bq.reshape(nheads, Dh),
                            bk.reshape(nheads, Dh),
                            bv.reshape(nheads, Dh)], axis=-1)   # (H, 3*Dh)
    bqkv = bqkv.reshape(nheads, 1, 3 * Dh).astype(jnp.float32)

    # Output projection split per head: (H, Dh, E), bf16.
    wo_h = out_w.T.reshape(nheads, Dh, E).astype(jnp.bfloat16)
    bo = out_b.reshape(1, E).astype(jnp.float32)
    gamma = gamma.reshape(1, E).astype(jnp.float32)
    beta = beta.reshape(1, E).astype(jnp.float32)
    return wqkv, bqkv, wo_h, bo, gamma, beta


# ---------------------------------------------------------------------------
# Plain-JAX reference (f32) for sanity checking.
# ---------------------------------------------------------------------------
def _reference(src, raw, nheads):
    in_w, in_b, out_w, out_b, gamma, beta = raw
    L, N, E = src.shape
    Dh = E // nheads
    x = jnp.transpose(src, (1, 0, 2)).astype(jnp.float32)           # (N, L, E)
    qkv = x @ in_w.T + in_b
    q, k, v = jnp.split(qkv, 3, axis=-1)

    def split_heads(t):
        return t.reshape(N, L, nheads, Dh).transpose(0, 2, 1, 3)

    q, k, v = map(split_heads, (q, k, v))
    s = jnp.einsum("nhqd,nhkd->nhqk", q, k) / math.sqrt(Dh)
    p = jax.nn.softmax(s, axis=-1)
    a = jnp.einsum("nhqk,nhkd->nhqd", p, v).transpose(0, 2, 1, 3).reshape(N, L, E)
    o = a @ out_w.T + out_b
    res = x + o
    mu = jnp.mean(res, axis=-1, keepdims=True)
    var = jnp.mean((res - mu) ** 2, axis=-1, keepdims=True)
    y = (res - mu) / jnp.sqrt(var + 1e-5) * gamma + beta
    return jnp.transpose(y, (1, 0, 2))


if __name__ == "__main__":
    d_model = 32
    nheads = 4
    seq_len = 8
    batch = 2

    key = jax.random.PRNGKey(0)
    k_src, k_param = jax.random.split(key)
    src = jax.random.normal(k_src, (seq_len, batch, d_model), jnp.float32)  # (L, N, E)

    raw = init_params(k_param, d_model)
    params = prepare_params(raw, nheads=nheads)

    out = flash_attention_layer(src, params, nheads=nheads)
    out = jax.block_until_ready(out)

    ref = _reference(src, raw, nheads)
    # Loose tolerance: kernel runs matmuls with bf16 operands (f32 accumulate).
    np.testing.assert_allclose(np.asarray(out), np.asarray(ref), rtol=5e-2, atol=5e-2)

    print("KERNEL_OK")
</pallas_src>

<mosaic_0001>
module attributes {stable_mosaic.version = 11 : i64} {
  func.func @_qkv_proj_kernel(%arg0: i32, %arg1: i32, %arg2: i32, %arg3: memref<1x8x32xf32, #tpu.memory_space<vmem>>, %arg4: memref<4x32x24xbf16, #tpu.memory_space<vmem>>, %arg5: memref<4x1x24xf32, #tpu.memory_space<vmem>>, %arg6: memref<1x1x8x8xbf16, #tpu.memory_space<vmem>>, %arg7: memref<1x1x8x8xbf16, #tpu.memory_space<vmem>>, %arg8: memref<1x1x8x8xbf16, #tpu.memory_space<vmem>>) attributes {dimension_semantics = [#tpu.dimension_semantics<parallel>, #tpu.dimension_semantics<parallel>, #tpu.dimension_semantics<parallel>], iteration_bounds = array<i64: 2, 1, 4>, scalar_prefetch = 0 : i64, scratch_operands = 0 : i64, tpu.core_type = #tpu.core_type<tc>, window_params = [{transform_indices = @transform_0, window_bounds = array<i64: 1, 8, 32>}, {pipeline_mode = #tpu.pipeline_mode<synchronous>, transform_indices = @transform_1, window_bounds = array<i64: 4, 32, 24>}, {pipeline_mode = #tpu.pipeline_mode<synchronous>, transform_indices = @transform_2, window_bounds = array<i64: 4, 1, 24>}, {transform_indices = @transform_3, window_bounds = array<i64: 1, 1, 8, 8>}, {transform_indices = @transform_4, window_bounds = array<i64: 1, 1, 8, 8>}, {transform_indices = @transform_5, window_bounds = array<i64: 1, 1, 8, 8>}]} {
    %c0 = arith.constant 0 : index
    %c0_0 = arith.constant 0 : index
    %c0_1 = arith.constant 0 : index
    %0 = vector.load %arg3[%c0, %c0_0, %c0_1] : memref<1x8x32xf32, #tpu.memory_space<vmem>>, vector<1x8x32xf32>
    %1 = vector.shape_cast %0 : vector<1x8x32xf32> to vector<8x32xf32>
    %2 = arith.truncf %1 : vector<8x32xf32> to vector<8x32xbf16>
    %3 = arith.index_cast %arg2 : i32 to index
    %c0_2 = arith.constant 0 : index
    %c0_3 = arith.constant 0 : index
    %4 = vector.load %arg4[%3, %c0_2, %c0_3] : memref<4x32x24xbf16, #tpu.memory_space<vmem>>, vector<1x32x24xbf16>
    %5 = vector.shape_cast %4 : vector<1x32x24xbf16> to vector<32x24xbf16>
    %cst = arith.constant dense<0.000000e+00> : vector<8x24xf32>
    %6 = tpu.matmul %2, %5, %cst {dimension_numbers = #tpu.dot_dimension_numbers<[1], [0], [0], [1], [0, 0, 1, 1], [], []>} : vector<8x32xbf16>, vector<32x24xbf16>, vector<8x24xf32> -> vector<8x24xf32>
    %7 = arith.index_cast %arg2 : i32 to index
    %c0_4 = arith.constant 0 : index
    %c0_5 = arith.constant 0 : index
    %8 = vector.load %arg5[%7, %c0_4, %c0_5] : memref<4x1x24xf32, #tpu.memory_space<vmem>>, vector<1x1x24xf32>
    %9 = vector.shape_cast %8 : vector<1x1x24xf32> to vector<1x24xf32>
    %10 = vector.broadcast %9 : vector<1x24xf32> to vector<8x24xf32>
    %11 = arith.addf %6, %10 : vector<8x24xf32>
    %12 = vector.extract_strided_slice %11 {offsets = [0, 0], sizes = [8, 8], strides = [1, 1]} : vector<8x24xf32> to vector<8x8xf32>
    %13 = arith.truncf %12 : vector<8x8xf32> to vector<8x8xbf16>
    %c0_6 = arith.constant 0 : index
    %c0_7 = arith.constant 0 : index
    %c0_8 = arith.constant 0 : index
    %c0_9 = arith.constant 0 : index
    %14 = vector.load %arg6[%c0_6, %c0_7, %c0_8, %c0_9] : memref<1x1x8x8xbf16, #tpu.memory_space<vmem>>, vector<1x1x8x8xbf16>
    %15 = vector.shape_cast %14 : vector<1x1x8x8xbf16> to vector<8x8xbf16>
    %16 = vector.shape_cast %13 : vector<8x8xbf16> to vector<1x1x8x8xbf16>
    tpu.vector_store %arg6[%c0_6, %c0_7, %c0_8, %c0_9], %16 {strides = array<i32>} : memref<1x1x8x8xbf16, #tpu.memory_space<vmem>>, vector<1x1x8x8xbf16>,
    %17 = vector.extract_strided_slice %11 {offsets = [0, 8], sizes = [8, 8], strides = [1, 1]} : vector<8x24xf32> to vector<8x8xf32>
    %18 = arith.truncf %17 : vector<8x8xf32> to vector<8x8xbf16>
    %c0_10 = arith.constant 0 : index
    %c0_11 = arith.constant 0 : index
    %c0_12 = arith.constant 0 : index
    %c0_13 = arith.constant 0 : index
    %19 = vector.load %arg7[%c0_10, %c0_11, %c0_12, %c0_13] : memref<1x1x8x8xbf16, #tpu.memory_space<vmem>>, vector<1x1x8x8xbf16>
    %20 = vector.shape_cast %19 : vector<1x1x8x8xbf16> to vector<8x8xbf16>
    %21 = vector.shape_cast %18 : vector<8x8xbf16> to vector<1x1x8x8xbf16>
    tpu.vector_store %arg7[%c0_10, %c0_11, %c0_12, %c0_13], %21 {strides = array<i32>} : memref<1x1x8x8xbf16, #tpu.memory_space<vmem>>, vector<1x1x8x8xbf16>,
    %22 = vector.extract_strided_slice %11 {offsets = [0, 16], sizes = [8, 8], strides = [1, 1]} : vector<8x24xf32> to vector<8x8xf32>
    %23 = arith.truncf %22 : vector<8x8xf32> to vector<8x8xbf16>
    %c0_14 = arith.constant 0 : index
    %c0_15 = arith.constant 0 : index
    %c0_16 = arith.constant 0 : index
    %c0_17 = arith.constant 0 : index
    %24 = vector.load %arg8[%c0_14, %c0_15, %c0_16, %c0_17] : memref<1x1x8x8xbf16, #tpu.memory_space<vmem>>, vector<1x1x8x8xbf16>
    %25 = vector.shape_cast %24 : vector<1x1x8x8xbf16> to vector<8x8xbf16>
    %26 = vector.shape_cast %23 : vector<8x8xbf16> to vector<1x1x8x8xbf16>
    tpu.vector_store %arg8[%c0_14, %c0_15, %c0_16, %c0_17], %26 {strides = array<i32>} : memref<1x1x8x8xbf16, #tpu.memory_space<vmem>>, vector<1x1x8x8xbf16>,
    return
  }
  func.func @transform_0(%arg0: i32, %arg1: i32, %arg2: i32) -> (i32, i32, i32) {
    %c0_i32 = arith.constant 0 : i32
    %c0_i32_0 = arith.constant 0 : i32
    return %arg0, %arg1, %c0_i32 : i32, i32, i32
  }
  func.func @transform_1(%arg0: i32, %arg1: i32, %arg2: i32) -> (i32, i32, i32) {
    %c0_i32 = arith.constant 0 : i32
    %c0_i32_0 = arith.constant 0 : i32
    %c0_i32_1 = arith.constant 0 : i32
    %c0_i32_2 = arith.constant 0 : i32
    return %c0_i32, %c0_i32_0, %c0_i32_1 : i32, i32, i32
  }
  func.func @transform_2(%arg0: i32, %arg1: i32, %arg2: i32) -> (i32, i32, i32) {
    %c0_i32 = arith.constant 0 : i32
    %c0_i32_0 = arith.constant 0 : i32
    %c0_i32_1 = arith.constant 0 : i32
    %c0_i32_2 = arith.constant 0 : i32
    return %c0_i32, %c0_i32_0, %c0_i32_1 : i32, i32, i32
  }
  func.func @transform_3(%arg0: i32, %arg1: i32, %arg2: i32) -> (i32, i32, i32, i32) {
    %c0_i32 = arith.constant 0 : i32
    %c0_i32_0 = arith.constant 0 : i32
    return %arg0, %arg2, %arg1, %c0_i32 : i32, i32, i32, i32
  }
  func.func @transform_4(%arg0: i32, %arg1: i32, %arg2: i32) -> (i32, i32, i32, i32) {
    %c0_i32 = arith.constant 0 : i32
    %c0_i32_0 = arith.constant 0 : i32
    return %arg0, %arg2, %arg1, %c0_i32 : i32, i32, i32, i32
  }
  func.func @transform_5(%arg0: i32, %arg1: i32, %arg2: i32) -> (i32, i32, i32, i32) {
    %c0_i32 = arith.constant 0 : i32
    %c0_i32_0 = arith.constant 0 : i32
    return %arg0, %arg2, %arg1, %c0_i32 : i32, i32, i32, i32
  }
}

</mosaic_0001>

<bundles_post_ra>
// kernel: tpu_custom_call.1
= control target key start
LH: loop header
LB: loop body
LE: loop exit
PB: predicated region body
PF: predicated region fallthrough
CT: control target
= control target key end

     0   :  { %11 = vsyncpa [#allocation3], 0  ;;  %s1130_s0 = inlined_call_operand.vmem [shape: f32[2,8,32], index: 0, kind: input, shape index: {}]   ;;  %s1131_s1 = inlined_call_operand.vmem [shape: bf16[4,32,24], index: 1, kind: input, shape index: {}]   ;;  %s1132_s2 = inlined_call_operand.vmem [shape: f32[4,1,24], index: 2, kind: input, shape index: {}]   ;;  %s1133_s3 = inlined_call_operand.hbm [shape: bf16[2,4,8,8], index: 3, kind: output, shape index: {0}]   ;;  %s1134_s4 = inlined_call_operand.hbm [shape: bf16[2,4,8,8], index: 4, kind: output, shape index: {1}]   ;;  %s1135_s5 = inlined_call_operand.hbm [shape: bf16[2,4,8,8], index: 5, kind: output, shape index: {2}]  }
   0x1   :  { %13 = vsyncpa [#allocation3 + $0x1], 0 }
   0x2   :  { %14 = vsyncpa [#allocation5], 0 }
   0x3   :  { %16 = vsyncpa [#allocation5 + $0x1], 0  ;;  %s896_s18 = smov 0   ;;  %s898_s19 = smov 0  }
   0x4   :  { %s900_s20 = smov 0   ;;  %s902_s21 = smov 0  }
   0x5   :  { %s904_s22 = smov 0   ;;  %s906_s23 = smov 0  }
   0x6   :  { %s908_s24 = smov 0   ;;  %s910_s25 = smov 0  }
   0x7 LB: > { %s1137_s26 = sadd.s32 4294967295, %s857_s25   ;;  %s1136_s27 = sadd.s32 4294967294, %s857_s25   ;;  %s857_s25 = sphi %s910_s25, %s22_s25   ;;  %s853_s24 = sphi %s908_s24, %s1152_s24   ;;  %s849_s23 = sphi %s906_s23, %s1151_s23   ;;  %s845_s22 = sphi %s904_s22, %s1150_s22   ;;  %s841_s21 = sphi %s902_s21, %s1149_s21   ;;  %s837_s20 = sphi %s900_s20, %s1148_s20   ;;  %s833_s19 = sphi %s898_s19, %s1147_s19   ;;  %s829_s18 = sphi %s896_s18, %s1146_s18  }
   0x8   : > { %s34_s28 = sadd.s32 1, %s849_s23  ;;  %s41_s29 = sadd.s32 1, %s853_s24 }
   0x9   : > { %p35_p0 = scmp.ge.s32.totalorder %s34_s28, 4  ;;  %p132_p1 = scmp.ne.s32.totalorder %s837_s20, %s833_s19 }
   0xa   : > { %p133_p2 = scmp.eq.s32.totalorder %s1137_s26, 7  ;;  %p138_p5 = scmp.ne.s32.totalorder %s833_s19, %s829_s18 }
   0xb   : > { %s1154_s28 = smov (%p35_p0, %s34_s28), 0  ;;  %s1156_s29 = smov (!%p35_p0, %s41_s29), %s853_s24 }
   0xc   : > { %s116_s30 = ssub.s32 %s849_s23, %s1154_s28  ;;  %p949_p3 = por %p133_p2, %p132_p1 }
   0xd   : > { %p43_p4 = scmp.ge.s32.totalorder %s1156_s29, 2  ;;  %p139_p6 = scmp.eq.s32.totalorder %s1136_s27, 7 }
   0xe   : > { %p580_p7 = scmp.ge.s32.totalorder %s857_s25, 1  ;;  %p233_p9 = scmp.lt.s32.totalorder %s857_s25, 9 }
   0xf   : > { %s1158_s29 = smov (%p43_p4, %s1156_s29), 0  ;;  %p960_p8 = por %p139_p6, %p138_p5 }
  0x10   : > { %s115_s8 = ssub.s32 %s853_s24, %s1158_s29  ;;  %s122_s9 = sadd.s32 1, %s837_s20 }
  0x11   : > { %s117_s10 = sor.u32 %s116_s30, %s115_s8  ;;  %p234_p10 = pnand %p580_p7, %p233_p9 }
  0x12   : > { %p120_p11 = scmp.eq.s32.totalorder %s117_s10, 0  ;;  %s603_s12 = sshll.u32 (!%p234_p10), %s841_s21, 4  ;;  %v859_v0 = vmov (!%p234_p10), 0.0   ;;  %vm860_vm0 = vmmov (!%p234_p10), 0   ;;  %vm310_vm1 = vcmask (!%p234_p10), 261120   ;;  %vm355_vm2 = vcmask (!%p234_p10), 60416  }
  0x13   : > { %237 = sbr.rel (%p234_p10) target bundleno = 403 (0x193), region = 32  ;;  %p273_p12 = scmp.lt.s32.totalorder (!%p234_p10), %s845_s22, 1  ;;  %608 = vmatprep.subr.bf16.mxu0 (!%p234_p10), %v859_v0  ;;  %612 = vmatprep.mubr.msk.bf16.mxu0 (!%p234_p10), %vm860_vm0, %v859_v0 }
  0x14   : > { %s969_s11 = scalar_select %p120_p11, %s837_s20, %s122_s9  }
  0x15   : > { %s285_s15 = scalar_lea.vmem (!%p234_p10), %s1131_s1, %s603_s12  ;;  %s256_s10 = sand.u32 (!%p234_p10), 1, %s833_s19  }
  0x16   : > { %v701_v1 = vld [vmem:[%s285_s15] sm:$0xff] (!%p234_p10)   ;;  %v702_v2 = vld [vmem:[%s285_s15 + $0x8] sm:$0xff] (!%p234_p10)   ;;  %s595_s12 = sshll.u32 (!%p234_p10), %s845_s22, 2  ;;  %s290_s27 = scalar_lea.vmem (!%p234_p10), %s1132_s2, %s841_s21 }
  0x17   : > { %609 = vmatpush3.bf16.msra.mxu0 (!%p234_p10), %v701_v1  ;;  %s986_s26 = sshll.u32 (!%p234_p10), %s256_s10, 2  ;;  %s391_s15 = sadd.s32 (!%p234_p10), %s841_s21, %s595_s12  ;;  %v587_v5 = vld [vmem:[%s290_s27] ss:$0 sm:$0xff] (!%p234_p10) }
  0x18   : > { %610 = vmatprep.subr.bf16.mxu0 (!%p234_p10), %v859_v0  ;;  %s861_s21 = smov (!%p234_p10), 120   ;;  %s369_s27 = scalar_lea.sflag (!%p234_p10), [#allocation3], %s256_s10 }
  0x19   : > { %s862_s13 = smov (!%p234_p10), [#allocation2]  }
  0x1a   : > { %s274_s16 = scalar_select %p273_p12, %s845_s22, 1 }
  0x1b   : > { %611 = vmatpush3.bf16.msra.mxu0 %v702_v2  ;;  %s707_s14 = sshll.u32 %s862_s13, 4  ;;  %s708_s14 = int_to_ptr.vmem [resolvable:$false] %s707_s14 }
  0x1c   : > { %s584_s17 = sshll.u32 %s274_s16, 3  ;;  %s989_s16 = sshll.u32 %s391_s15, 6 }
  0x1d   : > { %s279_s9 = scalar_lea.vmem %s1130_s0, %s584_s17  ;;  %s258_s17 = scalar_lea.vmem [#allocation2], %s986_s26 }
  0x1e   : > { %v281_v3 = vld [vmem:[%s279_s9] sm:$0xff]  ;;  %s395_s30 = sshll.u32 %s258_s17, 4  ;;  %s996_s9 = scalar_lea.hbm %s1133_s3, %s989_s16  ;;  %s998_s30 = int_to_ptr.vmem [resolvable:$true] %s395_s30 }
  0x1f   : > { %v282_v4 = vpack.c.bf16 %v281_v3, %v281_v3  ;;  %s703_s12 = scalar_lea.vmem %s998_s30, 64  ;;  %s709_s15 = scalar_lea.vmem %s708_s14, 128 }
  0x20   : > { %p704_p13 = scmp.ne.s32.totalorder %s998_s30, %s703_s12  ;;  %p710_p2 = scmp.lt.s32.totalorder %s998_s30, %s708_s14 }
  0x21   : > { %613 = vmatmul.mubr.msk.bf16.vlgmr.msra.gmra.mrb[0].mxu0 %vm310_vm1, %v282_v4  ;;  %p711_p4 = scmp.lt.s32.totalorder %s709_s15, %s703_s12 }
  0x22   : > { %p705_p0 = pnand %p704_p13, %p949_p3 }
  0x23   : > { %p712_p5 = por %p711_p4, %p710_p2 }
  0x24   : > { %p706_p1 = pneg %p705_p0 }
  0x26   : > { %p713_p6 = pnand %p712_p5, %p706_p1 }
  0xf4   : > { %v348_v6 = vpop.f32.mrb[0].mxu0 }
  0xf5   : > { %v349_v7 = vadd.f32 %v587_v5, %v348_v6  ;;  %v614_v8 = vpop.f32.mrb[1].mxu0 }
  0xf6   : > { %v351_v9 = vpop.f32.mrb[2].mxu0 }
  0xf7   : > { %v354_v10 = vpack.c.bf16 %v349_v7, %v349_v7  ;;  %v615_v11 = vpop.f32.mrb[3].mxu0 }
  0xf9   : > { %360 = vrot.lane.b32.xlu0 %v354_v10, %s861_s21  ;;  %356 = vst.msk [vmem:[%s258_s17] sm:$0xf] %vm355_vm2, %v354_v10 }
  0xfa   : > { %716 = shalt.err (!%p713_p6)
}
  0xfb   : > { %s717_s10 = scalar_lea.hbm %s996_s9, 64  ;;  %s721_s8 = scalar_lea.hbm %s1133_s3, 512 }
  0xfc   : > { %p718_p7 = scmp.ne.s32.totalorder %s996_s9, %s717_s10  ;;  %p722_p11 = scmp.lt.u32.totalorder %s996_s9, %s1133_s3 }
  0xfd   : > { %p723_p12 = scmp.lt.u32.totalorder %s721_s8, %s717_s10  ;;  %p725_p0 = scmp.lt.u32.totalorder %s717_s10, %s996_s9 }
  0xfe   : > { %p719_p9 = pnand %p718_p7, %p949_p3 }
  0xff   : > { %p724_p13 = por %p723_p12, %p722_p11 }
 0x100   : > { %p720_p10 = pneg %p719_p9 }
 0x101   : > { %p726_p1 = por %p725_p0, %p724_p13 }
 0x103   : > { %p727_p2 = pnand %p726_p1, %p720_p10 }
 0x105   : > { %730 = shalt.err (!%p727_p2)
}
 0x106   : > { %616 = dma.vmem_to_hbm [thread:$0]  (%p949_p3), %s998_s30, 64, %s996_s9, %s369_s27  }
 0x107   : > { %s863_s12 = smov 112   ;;  %s1141_s14 = sadd.s32 4294967295, %s857_s25  }
 0x108   : > { %364 = vrot.lane.b32.xlu0 %v354_v10, %s863_s12  ;;  %s1024_s15 = sand.u32 1, %s1141_s14   ;;  %s265_s10 = scalar_lea.vmem [#allocation4], %s986_s26 }
 0x109   : > { %s411_s17 = sshll.u32 %s265_s10, 4  ;;  %s1031_s21 = scalar_lea.hbm %s1134_s4, %s989_s16  ;;  %s1033_s17 = int_to_ptr.vmem [resolvable:$true] %s411_s17 }
 0x10a   : > { %s1138_s30 = scalar_lea.vmem [#allocation6], %s986_s26  ;;  %s731_s13 = scalar_lea.vmem %s1033_s17, 64 }
 0x10b   : > { %s1038_s9 = sshll.u32 %s1138_s30, 4  ;;  %p732_p4 = scmp.ne.s32.totalorder %s1033_s17, %s731_s13  ;;  %s1066_s9 = int_to_ptr.vmem [resolvable:$true] %s1038_s9 }
 0x10c   : > { %s864_s12 = smov [#allocation4]  }
 0x10d   : > { %p733_p5 = pnand %p732_p4, %p949_p3  ;;  %s735_s14 = sshll.u32 %s864_s12, 4  ;;  %s736_s14 = int_to_ptr.vmem [resolvable:$false] %s735_s14 }
 0x10e   : > { %s737_s22 = scalar_lea.vmem %s736_s14, 128  ;;  %p738_p7 = scmp.lt.s32.totalorder %s1033_s17, %s736_s14 }
 0x10f   : > { %p734_p6 = pneg %p733_p5  ;;  %p739_p9 = scmp.lt.s32.totalorder %s737_s22, %s731_s13 }
 0x111   : > { %p740_p10 = por %p739_p9, %p738_p7 }
 0x113   : > { %p741_p11 = pnand %p740_p10, %p734_p6 }
 0x16b   : > { %v361_v12 = vpop.permute.xlu0 %360 }
 0x16c   : > { %363 = vst.msk [vmem:[%s265_s10] sm:$0xf] %vm355_vm2, %v361_v12 }
 0x16d   : > { %744 = shalt.err (!%p741_p11)
}
 0x16e   : > { %s745_s10 = scalar_lea.hbm %s1031_s21, 64  ;;  %s749_s12 = scalar_lea.hbm %s1134_s4, 512 }
 0x16f   : > { %p746_p12 = scmp.ne.s32.totalorder %s1031_s21, %s745_s10  ;;  %p750_p1 = scmp.lt.u32.totalorder %s1031_s21, %s1134_s4 }
 0x170   : > { %p751_p2 = scmp.lt.u32.totalorder %s749_s12, %s745_s10  ;;  %p753_p5 = scmp.lt.u32.totalorder %s745_s10, %s1031_s21 }
 0x171   : > { %p747_p13 = pnand %p746_p12, %p949_p3 }
 0x172   : > { %p752_p4 = por %p751_p2, %p750_p1 }
 0x173   : > { %p748_p0 = pneg %p747_p13 }
 0x174   : > { %p754_p6 = por %p753_p5, %p752_p4 }
 0x176   : > { %p755_p7 = pnand %p754_p6, %p748_p0 }
 0x178   : > { %758 = shalt.err (!%p755_p7)
}
 0x179   : > { %s1142_s13 = scalar_lea.sflag [#allocation5], %s1024_s15  ;;  %s1072_s22 = scalar_lea.hbm %s1135_s5, %s989_s16 }
 0x17a   : > { %617 = dma.vmem_to_hbm [thread:$0]  (%p949_p3), %s1033_s17, 64, %s1031_s21, %s1142_s13   ;;  %v365_v13 = vpop.permute.xlu0 %364 }
 0x17b   : > { %s1143_s10 = scalar_lea.vmem [#allocation6], %s986_s26  ;;  %s759_s8 = scalar_lea.vmem %s1066_s9, 64 }
 0x17c   : > { %367 = vst.msk [vmem:[%s1143_s10] sm:$0xf] %vm355_vm2, %v365_v13  ;;  %p760_p9 = scmp.ne.s32.totalorder %s1066_s9, %s759_s8  ;;  %s865_s17 = smov [#allocation6]  }
 0x17d   : > { %s763_s21 = sshll.u32 %s865_s17, 4  ;;  %s764_s21 = int_to_ptr.vmem [resolvable:$false] %s763_s21 }
 0x17e   : > { %p761_p10 = pnand %p760_p9, %p949_p3  ;;  %s765_s12 = scalar_lea.vmem %s764_s21, 128 }
 0x17f   : > { %p766_p12 = scmp.lt.s32.totalorder %s1066_s9, %s764_s21  ;;  %p767_p13 = scmp.lt.s32.totalorder %s765_s12, %s759_s8 }
 0x180   : > { %p762_p11 = pneg %p761_p10 }
 0x181   : > { %p768_p0 = por %p767_p13, %p766_p12 }
 0x183   : > { %p769_p1 = pnand %p768_p0, %p762_p11 }
 0x185   : > { %772 = shalt.err (!%p769_p1)
}
 0x186   : > { %s773_s26 = scalar_lea.hbm %s1072_s22, 64  ;;  %s777_s13 = scalar_lea.hbm %s1135_s5, 512 }
 0x187   : > { %p774_p2 = scmp.ne.s32.totalorder %s1072_s22, %s773_s26  ;;  %p778_p6 = scmp.lt.u32.totalorder %s1072_s22, %s1135_s5 }
 0x188   : > { %p779_p7 = scmp.lt.u32.totalorder %s777_s13, %s773_s26  ;;  %p781_p10 = scmp.lt.u32.totalorder %s773_s26, %s1072_s22 }
 0x189   : > { %p775_p4 = pnand %p774_p2, %p949_p3 }
 0x18a   : > { %p780_p9 = por %p779_p7, %p778_p6 }
 0x18b   : > { %p776_p5 = pneg %p775_p4 }
 0x18c   : > { %p782_p11 = por %p781_p10, %p780_p9 }
 0x18e   : > { %p783_p12 = pnand %p782_p11, %p776_p5 }
 0x190   : > { %786 = shalt.err (!%p783_p12)
}
 0x191   : > { %s1144_s10 = scalar_lea.sflag [#allocation5], %s1024_s15 }
 0x192   : > { %618 = dma.vmem_to_hbm [thread:$0]  (%p949_p3), %s1066_s9, 64, %s1072_s22, %s1144_s10  }
 0x193 PF: > { %p632_p13 = scmp.ge.s32.totalorder %s857_s25, 2  ;;  %s439_s8 = sand.u32 1, %s829_s18  }
 0x194   : > { %s440_s17 = scalar_lea.sflag [#allocation3], %s439_s8 }
 0x195   : > { %p623_p0 = pnand %p632_p13, %p960_p8 }
 0x197   : > { %820 = dma.done.wait (!%p623_p0), %s440_s17, 64  }
 0x198   : > { %822 = vsyncadd (!%p623_p0), %s440_s17, 4294967232  ;;  %s1145_s21 = sadd.s32 4294967294, %s857_s25  }
 0x199   : > { %s448_s12 = sand.u32 1, %s1145_s21  }
 0x19a   : > { %s449_s6 = scalar_lea.sflag [#allocation5], %s448_s12 }
 0x19b   : > { %824 = dma.done.wait (!%p623_p0), %s449_s6, 128  }
 0x19c   : > { %826 = vsyncadd (!%p623_p0), %s449_s6, 4294967168  ;;  %s22_s25 = sadd.s32 1, %s857_s25   ;;  %s1146_s18 = smov %s833_s19 }
 0x19d   : > { %p19_p3 = scmp.ge.s32.totalorder %s22_s25, 10   ;;  %s1147_s19 = smov %s837_s20 }
 0x19e   : > { %s1148_s20 = smov %s969_s11  ;;  %s1149_s21 = smov %s849_s23 }
 0x19f   : > { %s1150_s22 = smov %s853_s24  ;;  %s1151_s23 = smov %s1154_s28 }
 0x1a0   : > { %s1152_s24 = smov %s1158_s29  ;;  %21 = sbr.rel (!%p19_p3) target bundleno = 7 (0x7), region = 101 }
 0x1a7   :  { %463 = vsyncpa [#allocation3], 1 }
 0x1a8   :  { %465 = vsyncpa [#allocation3 + $0x1], 1 }
 0x1a9   :  { %466 = vsyncpa [#allocation5], 1 }
 0x1aa   :  { %468 = vsyncpa [#allocation5 + $0x1], 1 }

</bundles_post_ra>
